<compile_context>
chip_gen: v5e
topology: v5e:2x2
jax: 0.10.0
libtpu: 0.0.40
codegen_flags: <defaults>
</compile_context>

<pallas_src>
import jax
import jax.numpy as jnp
from jax.experimental import pallas as pl
from jax.experimental.pallas import tpu as pltpu


def _round_up(x, m):
    return ((x + m - 1) // m) * m


def _make_discriminator_kernel(num_hidden_layers: int, non_linear: bool):
    """Kernel closure for a fixed number of hidden Linear layers."""

    def kernel(z_ref, *refs):
        # refs = (W0, b0, ..., W_{h-1}, b_{h-1}, W_mean_row, b_mean, out_ref)
        out_ref = refs[-1]
        params = refs[:-1]

        x = z_ref[...]                                   # (tile, D_in)

        # Hidden discriminator layers (the nn.Sequential part).
        for i in range(num_hidden_layers):
            w = params[2 * i][...]                       # (D_i, D_{i+1})
            b = params[2 * i + 1][...]                   # (1, D_{i+1}) f32
            x = jnp.dot(x.astype(w.dtype), w, preferred_element_type=jnp.float32)
            x = x + b.astype(jnp.float32)
            if non_linear:
                # F.leaky_relu, negative_slope=0.01 (single VPU select)
                x = jnp.maximum(x, 0.01 * x)

        # Final mean layer, computed in row form so the store is lane-dense:
        #   mu_row = W_mean_row (1, D_last) @ x.T (D_last, tile)  -> (1, tile)
        w_m = params[-2][...]                            # (1, D_last)
        b_m = params[-1][...]                            # (1, 1) f32
        x_t = x.astype(w_m.dtype).T                      # (D_last, tile)
        mu_row = jnp.dot(w_m, x_t, preferred_element_type=jnp.float32)
        mu_row = mu_row + b_m.astype(jnp.float32)        # broadcast (1,1) -> (1, tile)
        out_ref[...] = mu_row.astype(out_ref.dtype)

    return kernel


def discriminator_forward(z, weights, biases, *, non_linear=False,
                          batch_tile=None, compute_dtype=None):
    """Discriminator.forward(z) -> (B, 1) logits, fused into one Pallas kernel.

    z:       (B, D_in)
    weights: list of (D_i, D_{i+1}) arrays; last one maps to 1 output unit
             (i.e. transpose of torch's (out, in) weight layout)
    biases:  list of (1, D_{i+1}) arrays
    compute_dtype: e.g. jnp.bfloat16 for the bf16 MXU path (f32 accumulation kept).
    """
    B, D_in = z.shape
    assert len(weights) == len(biases) and len(weights) >= 1

    weights = [jnp.asarray(w) for w in weights]
    biases = [jnp.asarray(b, dtype=jnp.float32) for b in biases]

    if not non_linear:
        # Purely linear chain -> fold everything into one matvec in the wrapper.
        w_eff = weights[0].astype(jnp.float32)
        b_eff = biases[0]
        for w, b in zip(weights[1:], biases[1:]):
            w32 = w.astype(jnp.float32)
            w_eff = w_eff @ w32
            b_eff = b_eff @ w32 + b
        hidden_ws, hidden_bs = [], []
        w_mean, b_mean = w_eff, b_eff                    # (D_in, 1), (1, 1)
    else:
        hidden_ws, hidden_bs = list(weights[:-1]), list(biases[:-1])
        w_mean, b_mean = weights[-1], biases[-1]         # (D_last, 1), (1, 1)

    if compute_dtype is not None:
        z = z.astype(compute_dtype)
        hidden_ws = [w.astype(compute_dtype) for w in hidden_ws]
        w_mean = w_mean.astype(compute_dtype)

    w_mean_row = w_mean.T                                # (1, D_last) row layout

    # Batch tiling: big, lane/MXU-aligned tiles; pad B instead of asserting.
    if batch_tile is None:
        batch_tile = min(512, _round_up(B, 128))
    batch_tile = max(8, _round_up(batch_tile, 8))
    B_pad = _round_up(B, batch_tile)
    if B_pad != B:
        z = jnp.pad(z, ((0, B_pad - B), (0, 0)))
    num_tiles = B_pad // batch_tile

    num_hidden = len(hidden_ws)
    kernel = _make_discriminator_kernel(num_hidden, non_linear)

    # z tiled over batch; params fully resident, replicated via constant index maps.
    in_specs = [pl.BlockSpec((batch_tile, D_in), lambda i: (i, 0))]
    flat_params = []
    for w, b in zip(hidden_ws, hidden_bs):
        in_specs.append(pl.BlockSpec(w.shape, lambda i: (0, 0)))
        in_specs.append(pl.BlockSpec(b.shape, lambda i: (0, 0)))
        flat_params += [w, b]
    in_specs.append(pl.BlockSpec(w_mean_row.shape, lambda i: (0, 0)))
    in_specs.append(pl.BlockSpec(b_mean.shape, lambda i: (0, 0)))
    flat_params += [w_mean_row, b_mean]

    # Lane-dense output: one (1, batch_tile) row per grid step (batch on lanes).
    out_spec = pl.BlockSpec((1, batch_tile), lambda i: (i, 0))

    out2d = pl.pallas_call(
        kernel,
        out_shape=jax.ShapeDtypeStruct((num_tiles, batch_tile), jnp.float32),
        grid_spec=pltpu.PrefetchScalarGridSpec(
            num_scalar_prefetch=0,
            grid=(num_tiles,),
            in_specs=in_specs,
            out_specs=out_spec,
        ),
        compiler_params=pltpu.CompilerParams(
            # Independent batch axis -> sharded across TensorCores (v7x megacore).
            dimension_semantics=("parallel",),
            # NOTE: z tile + double buffering is only a few hundred KiB at these dims;
            # raise vmem_limit_bytes here if batch_tile * D_in grows past the scoped
            # VMEM default (esp. v5e's 16 MiB).
        ),
    )(z, *flat_params)

    return out2d.reshape(-1, 1)[:B]                      # back to (B, 1)


def init_discriminator_params(key, hidden_dim):
    """Synthetic params matching Discriminator.__init__ layer shapes.

    hidden_dim is the constructor list; it is reversed internally, exactly as in
    Discriminator.__init__. Weights stored pre-transposed as (in, out); biases (1, out).
    """
    hidden_dims = hidden_dim[::-1]
    layer_sizes = list(hidden_dims) + [1]                # layer_sizes_discriminator
    weights, biases = [], []
    for d0, d1 in zip(layer_sizes[:-1], layer_sizes[1:]):
        key, kw, kb = jax.random.split(key, 3)
        weights.append(jax.random.normal(kw, (d0, d1), dtype=jnp.float32) * 0.05)
        biases.append(jax.random.normal(kb, (1, d1), dtype=jnp.float32) * 0.05)
    return weights, biases


def discriminator_reference(z, weights, biases, non_linear=False):
    """Plain-JAX reference for correctness checking."""
    x = z
    for w, b in zip(weights[:-1], biases[:-1]):
        x = x @ w + b
        if non_linear:
            x = jnp.where(x > 0, x, 0.01 * x)
    return x @ weights[-1] + biases[-1]


# TODO(synk): Encoder/Decoder forwards, torch.distributions.Normal, optimizers and the
# loss functions of cVAE are host/training-side logic and are not part of this kernel.

if __name__ == "__main__":
    key = jax.random.PRNGKey(0)

    # cVAE(hidden_dim=[32], latent_dim=64) -> discriminator hidden_dim = [32, 64]
    # reversed -> [64, 32]; layer_sizes_discriminator = [64, 32, 1]
    # => z feature dim 64, one hidden Linear(64->32), mean Linear(32->1).
    hidden_dim = [32, 64]
    latent_features = 64
    batch = 16

    key, kz, kz2, kp = jax.random.split(key, 4)
    z = jax.random.normal(kz, (batch, latent_features), dtype=jnp.float32)
    weights, biases = init_discriminator_params(kp, hidden_dim)

    # 1) non_linear=True, f32 path.
    out = jax.block_until_ready(
        discriminator_forward(z, weights, biases, non_linear=True))
    ref = discriminator_reference(z, weights, biases, non_linear=True)
    assert out.shape == (batch, 1)
    assert jnp.allclose(out, ref, atol=1e-4, rtol=1e-4), "nonlinear f32 mismatch"

    # 2) non_linear=False -> collapsed single-matvec kernel.
    out_lin = jax.block_until_ready(
        discriminator_forward(z, weights, biases, non_linear=False))
    ref_lin = discriminator_reference(z, weights, biases, non_linear=False)
    assert jnp.allclose(out_lin, ref_lin, atol=1e-4, rtol=1e-4), "linear mismatch"

    # 3) bf16 operands (v6e/v7x MXU path), f32 accumulation.
    out_bf16 = jax.block_until_ready(
        discriminator_forward(z, weights, biases, non_linear=True,
                              compute_dtype=jnp.bfloat16))
    assert jnp.allclose(out_bf16, ref, atol=5e-2, rtol=5e-2), "bf16 mismatch"

    # 4) non-divisible batch + multi-step grid (exercises padding and parallel axis).
    z2 = jax.random.normal(kz2, (300, latent_features), dtype=jnp.float32)
    out2 = jax.block_until_ready(
        discriminator_forward(z2, weights, biases, non_linear=True, batch_tile=128))
    ref2 = discriminator_reference(z2, weights, biases, non_linear=True)
    assert out2.shape == (300, 1)
    assert jnp.allclose(out2, ref2, atol=1e-4, rtol=1e-4), "padded batch mismatch"

    print("KERNEL_OK")
</pallas_src>

<mosaic_0001>
module attributes {stable_mosaic.version = 11 : i64} {
  func.func @kernel(%arg0: i32, %arg1: memref<128x64xf32, #tpu.memory_space<vmem>>, %arg2: memref<64x32xf32, #tpu.memory_space<vmem>>, %arg3: memref<1x32xf32, #tpu.memory_space<vmem>>, %arg4: memref<1x32xf32, #tpu.memory_space<vmem>>, %arg5: memref<1x1xf32, #tpu.memory_space<vmem>>, %arg6: memref<1x128xf32, #tpu.memory_space<vmem>>) attributes {dimension_semantics = [#tpu.dimension_semantics<parallel>], iteration_bounds = array<i64: 1>, scalar_prefetch = 0 : i64, scratch_operands = 0 : i64, tpu.core_type = #tpu.core_type<tc>, window_params = [{transform_indices = @transform_0, window_bounds = array<i64: 128, 64>}, {pipeline_mode = #tpu.pipeline_mode<synchronous>, transform_indices = @transform_1, window_bounds = array<i64: 64, 32>}, {pipeline_mode = #tpu.pipeline_mode<synchronous>, transform_indices = @transform_2, window_bounds = array<i64: 1, 32>}, {pipeline_mode = #tpu.pipeline_mode<synchronous>, transform_indices = @transform_3, window_bounds = array<i64: 1, 32>}, {pipeline_mode = #tpu.pipeline_mode<synchronous>, transform_indices = @transform_4, window_bounds = array<i64: 1, 1>}, {transform_indices = @transform_5, window_bounds = array<i64: 1, 128>}]} {
    %c0 = arith.constant 0 : index
    %c0_0 = arith.constant 0 : index
    %0 = vector.load %arg1[%c0, %c0_0] : memref<128x64xf32, #tpu.memory_space<vmem>>, vector<128x64xf32>
    %c0_1 = arith.constant 0 : index
    %c0_2 = arith.constant 0 : index
    %1 = vector.load %arg2[%c0_1, %c0_2] : memref<64x32xf32, #tpu.memory_space<vmem>>, vector<64x32xf32>
    %c0_3 = arith.constant 0 : index
    %c0_4 = arith.constant 0 : index
    %2 = vector.load %arg3[%c0_3, %c0_4] : memref<1x32xf32, #tpu.memory_space<vmem>>, vector<1x32xf32>
    %cst = arith.constant dense<0.000000e+00> : vector<128x32xf32>
    %3 = tpu.matmul %0, %1, %cst {dimension_numbers = #tpu.dot_dimension_numbers<[1], [0], [0], [1], [0, 0, 1, 1], [], []>} : vector<128x64xf32>, vector<64x32xf32>, vector<128x32xf32> -> vector<128x32xf32>
    %4 = vector.broadcast %2 : vector<1x32xf32> to vector<128x32xf32>
    %5 = arith.addf %3, %4 : vector<128x32xf32>
    %cst_5 = arith.constant 0.00999999977 : f32
    %6 = vector.broadcast %cst_5 : f32 to vector<128x32xf32>
    %7 = arith.mulf %6, %5 : vector<128x32xf32>
    %8 = arith.maximumf %5, %7 : vector<128x32xf32>
    %c0_6 = arith.constant 0 : index
    %c0_7 = arith.constant 0 : index
    %9 = vector.load %arg4[%c0_6, %c0_7] : memref<1x32xf32, #tpu.memory_space<vmem>>, vector<1x32xf32>
    %c0_8 = arith.constant 0 : index
    %c0_9 = arith.constant 0 : index
    %10 = vector.load %arg5[%c0_8, %c0_9] : memref<1x1xf32, #tpu.memory_space<vmem>>, vector<1x1xf32>
    %11 = tpu.transpose %8, [1, 0] : vector<128x32xf32> -> vector<32x128xf32>
    %cst_10 = arith.constant dense<0.000000e+00> : vector<1x128xf32>
    %12 = tpu.matmul %9, %11, %cst_10 {dimension_numbers = #tpu.dot_dimension_numbers<[1], [0], [0], [1], [0, 0, 1, 1], [], []>} : vector<1x32xf32>, vector<32x128xf32>, vector<1x128xf32> -> vector<1x128xf32>
    %13 = vector.broadcast %10 : vector<1x1xf32> to vector<1x128xf32>
    %14 = arith.addf %12, %13 : vector<1x128xf32>
    %c0_11 = arith.constant 0 : index
    %c0_12 = arith.constant 0 : index
    %15 = vector.load %arg6[%c0_11, %c0_12] : memref<1x128xf32, #tpu.memory_space<vmem>>, vector<1x128xf32>
    tpu.vector_store %arg6[%c0_11, %c0_12], %14 {strides = array<i32>} : memref<1x128xf32, #tpu.memory_space<vmem>>, vector<1x128xf32>,
    return
  }
  func.func @transform_0(%arg0: i32) -> (i32, i32) {
    %c0_i32 = arith.constant 0 : i32
    %c0_i32_0 = arith.constant 0 : i32
    return %arg0, %c0_i32 : i32, i32
  }
  func.func @transform_1(%arg0: i32) -> (i32, i32) {
    %c0_i32 = arith.constant 0 : i32
    %c0_i32_0 = arith.constant 0 : i32
    %c0_i32_1 = arith.constant 0 : i32
    return %c0_i32, %c0_i32_0 : i32, i32
  }
  func.func @transform_2(%arg0: i32) -> (i32, i32) {
    %c0_i32 = arith.constant 0 : i32
    %c0_i32_0 = arith.constant 0 : i32
    %c0_i32_1 = arith.constant 0 : i32
    return %c0_i32, %c0_i32_0 : i32, i32
  }
  func.func @transform_3(%arg0: i32) -> (i32, i32) {
    %c0_i32 = arith.constant 0 : i32
    %c0_i32_0 = arith.constant 0 : i32
    %c0_i32_1 = arith.constant 0 : i32
    return %c0_i32, %c0_i32_0 : i32, i32
  }
  func.func @transform_4(%arg0: i32) -> (i32, i32) {
    %c0_i32 = arith.constant 0 : i32
    %c0_i32_0 = arith.constant 0 : i32
    %c0_i32_1 = arith.constant 0 : i32
    return %c0_i32, %c0_i32_0 : i32, i32
  }
  func.func @transform_5(%arg0: i32) -> (i32, i32) {
    %c0_i32 = arith.constant 0 : i32
    %c0_i32_0 = arith.constant 0 : i32
    return %arg0, %c0_i32 : i32, i32
  }
}

</mosaic_0001>

<bundles_post_ra>
// kernel: tpu_custom_call.1
= control target key start
LH: loop header
LB: loop body
LE: loop exit
PB: predicated region body
PF: predicated region fallthrough
CT: control target
= control target key end

     0   :  { %s546_s0 = inlined_call_operand.vmem [shape: f32[128,64], index: 0, kind: input, shape index: {}]   ;;  %s547_s1 = inlined_call_operand.vmem [shape: f32[64,32], index: 1, kind: input, shape index: {}]   ;;  %s548_s2 = inlined_call_operand.vmem [shape: f32[1,32], index: 2, kind: input, shape index: {}]   ;;  %s549_s3 = inlined_call_operand.vmem [shape: f32[1,32], index: 3, kind: input, shape index: {}]   ;;  %s550_s4 = inlined_call_operand.<no memory space> [shape: f32[1,1], index: 4, kind: input, shape index: {}]   ;;  %s551_s5 = inlined_call_operand.hbm [shape: f32[1,128], index: 5, kind: output, shape index: {}]  }
   0x1   :  { %v10_v0 = vstv %s550_s4 }
   0x2   :  { %11 = vst [vmem:[#allocation2] sm:$0x1] %v10_v0 }
   0x3   :  { %v46_v1 = vld [vmem:[%s547_s1 + $0x38] sm:$0xff]  ;;  %v45_v2 = vld [vmem:[%s547_s1 + $0x30] sm:$0xff]  ;;  %v44_v3 = vld [vmem:[%s547_s1 + $0x28] sm:$0xff] }
   0x4   :  { %327 = vmatpush.msra.mxu2 %v46_v1  ;;  %328 = vmatpush.msra.mxu3 %v46_v1  ;;  %v43_v4 = vld [vmem:[%s547_s1 + $0x20] sm:$0xff] }
   0x5   :  { %108 = vmatpush.msra.mxu0 %v46_v1 }
   0x6   :  { %329 = vmatpush.msra.mxu2 %v45_v2  ;;  %330 = vmatpush.msra.mxu3 %v45_v2 }
   0x7   :  { %109 = vmatpush.msra.mxu0 %v45_v2 }
   0x8   :  { %331 = vmatpush.msra.mxu2 %v44_v3  ;;  %332 = vmatpush.msra.mxu3 %v44_v3 }
   0x9   :  { %12 = vsyncpa [#allocation4], 0  ;;  %v42_v5 = vld [vmem:[%s547_s1 + $0x18] sm:$0xff]  ;;  %110 = vmatpush.msra.mxu0 %v44_v3  ;;  %v41_v6 = vld [vmem:[%s547_s1 + $0x10] sm:$0xff]  ;;  %vm51_vm0 = vcmask 523264   ;;  %vm205_vm1 = vcmask 261120  }
   0xa   :  { %333 = vmatpush.msra.mxu2 %v43_v4  ;;  %334 = vmatpush.msra.mxu3 %v43_v4  ;;  %v40_v7 = vld [vmem:[%s547_s1 + $0x8] sm:$0xff]  ;;  %v39_v8 = vld [vmem:[%s547_s1] sm:$0xff]  ;;  %v29_v9 = vld [vmem:[%s546_s0 + $0x30] sm:$0xff]  ;;  %s374_s16 = smov [#allocation3]   ;;  %s285_s20 = sshll.u32 %s551_s5, 4  ;;  %s286_s20 = int_to_ptr.hbm [resolvable:$true] %s285_s20 }
   0xb   :  { %111 = vmatpush.msra.mxu0 %v43_v4  ;;  %v35_v10 = vld [vmem:[%s546_s0 + $0x60] sm:$0xff]  ;;  %v30_v12 = vld [vmem:[%s546_s0 + $0x38] sm:$0xff]  ;;  %v36_v13 = vld [vmem:[%s546_s0 + $0x68] sm:$0xff]  ;;  %s283_s17 = sshll.u32 %s374_s16, 4  ;;  %s284_s17 = int_to_ptr.vmem [resolvable:$true] %s283_s17 }
   0xc   :  { %335 = vmatpush.msra.mxu2 %v42_v5  ;;  %336 = vmatpush.msra.mxu3 %v42_v5  ;;  %v23_v11 = vld [vmem:[%s546_s0] sm:$0xff]  ;;  %v24_v14 = vld [vmem:[%s546_s0 + $0x8] sm:$0xff]  ;;  %v37_v16 = vld [vmem:[%s546_s0 + $0x70] sm:$0xff] }
   0xd   :  { %112 = vmatpush.msra.mxu0 %v42_v5  ;;  %v31_v15 = vld [vmem:[%s546_s0 + $0x40] sm:$0xff]  ;;  %v25_v17 = vld [vmem:[%s546_s0 + $0x10] sm:$0xff]  ;;  %v32_v18 = vld [vmem:[%s546_s0 + $0x48] sm:$0xff] }
   0xe   :  { %337 = vmatpush.msra.mxu2 %v41_v6  ;;  %338 = vmatpush.msra.mxu3 %v41_v6  ;;  %v38_v19 = vld [vmem:[%s546_s0 + $0x78] sm:$0xff]  ;;  %v33_v21 = vld [vmem:[%s546_s0 + $0x50] sm:$0xff]  ;;  %v27_v22 = vld [vmem:[%s546_s0 + $0x20] sm:$0xff] }
   0xf   :  { %113 = vmatpush.msra.mxu0 %v41_v6  ;;  %v26_v20 = vld [vmem:[%s546_s0 + $0x18] sm:$0xff]  ;;  %v28_v24 = vld [vmem:[%s546_s0 + $0x28] sm:$0xff]  ;;  %v503_v33 = vld [vmem:[%s548_s2] ss:$0 sm:$0xff] }
  0x10   :  { %339 = vmatpush.msra.mxu2 %v40_v7  ;;  %340 = vmatpush.msra.mxu3 %v40_v7  ;;  %v34_v23 = vld [vmem:[%s546_s0 + $0x58] sm:$0xff] }
  0x11   :  { %114 = vmatpush.msra.mxu0 %v40_v7 }
  0x12   :  { %341 = vmatpush.msra.mxu2 %v39_v8  ;;  %342 = vmatpush.msra.mxu3 %v39_v8 }
  0x13   :  { %300 = vmatmul.msk.f32.vlgmr.msra.gmra.mxu2 %vm51_vm0, %v29_v9  ;;  %306 = vmatmul.msk.f32.vlgmr.msra.gmra.mxu3 %vm51_vm0, %v35_v10  ;;  %v373_v9 = vmov 0  }
  0x14   :  { %115 = vmatpush.msra.mxu0 %v39_v8  ;;  %v198_v8 = vld [vmem:[#allocation2] sm:$0x1]  ;;  %345 = vset.pattern.permute.xlu0 %v373_v9 }
  0x15   :  { %294 = vmatmul.msk.f32.vlgmr.msra.gmra.mxu0 %vm51_vm0, %v23_v11  ;;  %201 = vperm.xlu0 %345, %v198_v8  }
  0x1b   :  { %301 = vmatmul.msk.f32.gmra.mxu2 %vm51_vm0, %v30_v12  ;;  %307 = vmatmul.msk.f32.gmra.mxu3 %vm51_vm0, %v36_v13 }
  0x1d   :  { %295 = vmatmul.msk.f32.gmra.mxu0 %vm51_vm0, %v24_v14 }
  0x23   :  { %302 = vmatmul.msk.f32.gmra.mxu2 %vm51_vm0, %v31_v15  ;;  %308 = vmatmul.msk.f32.gmra.mxu3 %vm51_vm0, %v37_v16 }
  0x25   :  { %296 = vmatmul.msk.f32.gmra.mxu0 %vm51_vm0, %v25_v17 }
  0x2b   :  { %303 = vmatmul.msk.f32.gmra.mxu2 %vm51_vm0, %v32_v18  ;;  %309 = vmatmul.msk.f32.gmra.mxu3 %vm51_vm0, %v38_v19 }
  0x2d   :  { %297 = vmatmul.msk.f32.gmra.mxu0 %vm51_vm0, %v26_v20 }
  0x33   :  { %304 = vmatmul.msk.f32.gmra.mxu2 %vm51_vm0, %v33_v21 }
  0x35   :  { %298 = vmatmul.msk.f32.gmra.mxu0 %vm51_vm0, %v27_v22 }
  0x3b   :  { %305 = vmatmul.msk.f32.gmra.mxu2 %vm51_vm0, %v34_v23 }
  0x3d   :  { %299 = vmatmul.msk.f32.gmra.mxu0 %vm51_vm0, %v28_v24 }
  0x92   :  { %v496_v27 = vpop.f32.mrf.mxu0 }
  0x93   :  { %v118_v22 = vadd.f32 %v503_v33, %v496_v27 }
  0x96   :  { %v135_v25 = vpop.f32.mrf.mxu2  ;;  %v153_v26 = vpop.f32.mrf.mxu3 }
  0x97   :  { %v154_v44 = vadd.f32 %v503_v33, %v153_v26  ;;  %v136_v1 = vadd.f32 %v503_v33, %v135_v25  ;;  %v165_v25 = vmul.f32 0.01, %v118_v22 }
  0x99   :  { %v177_v47 = vmul.f32 0.01, %v154_v44  ;;  %v171_v5 = vmul.f32 0.01, %v136_v1 }
  0x9a   :  { %v498_v32 = vpop.f32.mrf.mxu0 }
  0x9b   :  { %v193_v51 = vmax.f32 %v154_v44, %v177_v47  ;;  %v187_v10 = vmax.f32 %v136_v1, %v171_v5  ;;  %v121_v19 = vadd.f32 %v503_v33, %v498_v32 }
  0x9d   :  { %v166_v23 = vmul.f32 0.01, %v121_v19 }
  0x9e   :  { %v138_v28 = vpop.f32.mrf.mxu2  ;;  %v156_v29 = vpop.f32.mrf.mxu3 }
  0x9f   :  { %v157_v40 = vadd.f32 %v503_v33, %v156_v29  ;;  %v139_v62 = vadd.f32 %v503_v33, %v138_v28  ;;  %v182_v26 = vmax.f32 %v121_v19, %v166_v23  ;;  %v181_v28 = vmax.f32 %v118_v22, %v165_v25  ;;  %v197_v29 = vld [vmem:[%s549_s3] sm:$0x1] }
  0xa1   :  { %v178_v45 = vmul.f32 0.01, %v157_v40  ;;  %v172_v2 = vmul.f32 0.01, %v139_v62 }
  0xa2   :  { %v123_v39 = vpop.f32.mrf.mxu0 }
  0xa3   :  { %v194_v48 = vmax.f32 %v157_v40, %v178_v45  ;;  %v188_v6 = vmax.f32 %v139_v62, %v172_v2  ;;  %v124_v16 = vadd.f32 %v503_v33, %v123_v39 }
  0xa5   :  { %v167_v20 = vmul.f32 0.01, %v124_v16 }
  0xa6   :  { %v141_v30 = vpop.f32.mrf.mxu2  ;;  %v159_v31 = vpop.f32.mrf.mxu3 }
  0xa7   :  { %v160_v36 = vadd.f32 %v503_v33, %v159_v31  ;;  %v142_v59 = vadd.f32 %v503_v33, %v141_v30  ;;  %v183_v24 = vmax.f32 %v124_v16, %v167_v20  ;;  %v202_v30 = vpop.permute.xlu0 %201 }
  0xa8   :  { %v204_v31 = vperm.slane %v202_v30, 0 }
  0xa9   :  { %v179_v41 = vmul.f32 0.01, %v160_v36  ;;  %v173_v63 = vmul.f32 0.01, %v142_v59 }
  0xaa   :  { %v126_v49 = vpop.f32.mrf.mxu0 }
  0xab   :  { %v195_v46 = vmax.f32 %v160_v36, %v179_v41  ;;  %v189_v3 = vmax.f32 %v142_v59, %v173_v63  ;;  %v127_v13 = vadd.f32 %v503_v33, %v126_v49 }
  0xad   :  { %v168_v17 = vmul.f32 0.01, %v127_v13 }
  0xae   :  { %v144_v34 = vpop.f32.mrf.mxu2  ;;  %v162_v35 = vpop.f32.mrf.mxu3 }
  0xaf   :  { %v163_v37 = vadd.f32 %v503_v33, %v162_v35  ;;  %v145_v55 = vadd.f32 %v503_v33, %v144_v34  ;;  %v184_v21 = vmax.f32 %v127_v13, %v168_v17 }
  0xb1   :  { %v180_v38 = vmul.f32 0.01, %v163_v37  ;;  %v174_v60 = vmul.f32 0.01, %v145_v55 }
  0xb2   :  { %v129_v58 = vpop.f32.mrf.mxu0 }
  0xb3   :  { %v196_v42 = vmax.f32 %v163_v37, %v180_v38  ;;  %v190_v0 = vmax.f32 %v145_v55, %v174_v60  ;;  %v130_v11 = vadd.f32 %v503_v33, %v129_v58 }
  0xb5   :  { %310 = vmatpush.xpose.msk.msra.mxu1 %vm205_vm1, %v196_v42  ;;  %v169_v14 = vmul.f32 0.01, %v130_v11 }
  0xb6   :  { %v147_v43 = vpop.f32.mrf.mxu2 }
  0xb7   :  { %v148_v52 = vadd.f32 %v503_v33, %v147_v43  ;;  %v185_v18 = vmax.f32 %v130_v11, %v169_v14 }
  0xb9   :  { %311 = vmatpush.xpose.msk.msra.mxu1 %vm205_vm1, %v195_v46  ;;  %v175_v56 = vmul.f32 0.01, %v148_v52 }
  0xba   :  { %v132_v4 = vpop.f32.mrf.mxu0 }
  0xbb   :  { %v191_v61 = vmax.f32 %v148_v52, %v175_v56  ;;  %v133_v7 = vadd.f32 %v503_v33, %v132_v4 }
  0xbd   :  { %312 = vmatpush.xpose.msk.msra.mxu1 %vm205_vm1, %v194_v48  ;;  %v170_v12 = vmul.f32 0.01, %v133_v7 }
  0xbe   :  { %v150_v50 = vpop.f32.mrf.mxu2 }
  0xbf   :  { %v151_v53 = vadd.f32 %v503_v33, %v150_v50  ;;  %v186_v15 = vmax.f32 %v133_v7, %v170_v12 }
  0xc1   :  { %v176_v54 = vmul.f32 0.01, %v151_v53  ;;  %313 = vmatpush.xpose.msk.msra.mxu1 %vm205_vm1, %v193_v51 }
  0xc3   :  { %v192_v57 = vmax.f32 %v151_v53, %v176_v54 }
  0xc5   :  { %314 = vmatpush.xpose.msk.msra.mxu1 %vm205_vm1, %v192_v57 }
  0xc9   :  { %315 = vmatpush.xpose.msk.msra.mxu1 %vm205_vm1, %v191_v61 }
  0xcd   :  { %316 = vmatpush.xpose.msk.msra.mxu1 %vm205_vm1, %v190_v0 }
  0xd1   :  { %317 = vmatpush.xpose.msk.msra.mxu1 %vm205_vm1, %v189_v3 }
  0xd5   :  { %318 = vmatpush.xpose.msk.msra.mxu1 %vm205_vm1, %v188_v6 }
  0xd9   :  { %319 = vmatpush.xpose.msk.msra.mxu1 %vm205_vm1, %v187_v10 }
  0xdd   :  { %320 = vmatpush.xpose.msk.msra.mxu1 %vm205_vm1, %v186_v15 }
  0xe1   :  { %321 = vmatpush.xpose.msk.msra.mxu1 %vm205_vm1, %v185_v18 }
  0xe5   :  { %322 = vmatpush.xpose.msk.msra.mxu1 %vm205_vm1, %v184_v21 }
  0xe9   :  { %323 = vmatpush.xpose.msk.msra.mxu1 %vm205_vm1, %v183_v24 }
  0xed   :  { %324 = vmatpush.xpose.msk.msra.mxu1 %vm205_vm1, %v182_v26 }
  0xf1   :  { %325 = vmatpush.xpose.msk.msra.mxu1 %vm205_vm1, %v181_v28 }
  0xf4   :  { %326 = vmatmul.msk.f32.vlgmr.msra.gmra.mxu1 %vm205_vm1, %v197_v29 }
 0x171   :  { %v274_v27 = vpop.f32.mrf.mxu1 }
 0x172   :  { %v275_v32 = vadd.f32 %v274_v27, %v204_v31 }
 0x174   :  { %277 = vst [vmem:[#allocation3] sm:$0x1] %v275_v32 }
 0x175   :  { %288 = dma.vmem_to_hbm [thread:$0]  %s284_s17, 16, %s286_s20, [#allocation4]  }
 0x176   :  { %371 = dma.done.wait [#allocation4], 16  }
 0x177   :  { %372 = vsyncadd [#allocation4], 4294967280 }
 0x178   :  { %293 = vsyncpa [#allocation4], 1 }

</bundles_post_ra>
